<compile_context>
chip_gen: v7x
topology: tpu7x:2x2x1
jax: 0.10.0
libtpu: 0.0.40
codegen_flags: <defaults>
</compile_context>

<pallas_src>
import numpy as np
import jax
import jax.numpy as jnp
from jax.experimental import pallas as pl
from jax.experimental.pallas import tpu as pltpu


def acdc_kernel(x_ref, m_ref, b_ref, yre_ref, yim_ref):
    # x_ref: (C, TN)   m_ref: (2C, C) = [M_re; M_im]   b_ref: (C, 1)
    C = yre_ref.shape[0]
    y = jnp.dot(m_ref[...], x_ref[...], preferred_element_type=jnp.float32)  # (2C, TN)
    yre_ref[...] = y[:C, :] + b_ref[...]     # row split at C (multiple of 8) = free view
    yim_ref[...] = y[C:, :]


def acdc_forward(x, A, D, bias, perm, tn=4096):
    """x: (B, C, H, W) float32; A, D, bias: (C,); perm: (C,) int. Returns complex64 (B, C, H, W)."""
    B, C, H, W = x.shape
    n = C                              # in_f == out_f
    HW = H * W

    # ---- lane tile: big, multiple of 128 (or the full spatial extent) ----
    if HW <= tn:
        tn_eff = HW                    # full-extent block is always layout-legal
    else:
        tn_eff = max(128, (tn // 128) * 128)
    n_lane = pl.cdiv(HW, tn_eff)       # ragged last block is masked by Pallas

    # ---- free view: NCHW -> (B, C, H*W); no transpose, no pad ----
    x3d = x.reshape(B, C, HW)

    # ---- fold A, DFT, D, IDFT, perm and 1/(n*sqrt(n)) into one (2C, C) matrix ----
    idx = jnp.arange(n, dtype=jnp.float32)
    ang_f = 2.0 * jnp.pi * jnp.outer(idx, idx) / n               # forward: exp(-2*pi*i*k*c/n)
    F_re = jnp.cos(ang_f)
    F_im = -jnp.sin(ang_f)
    inv_scale = 1.0 / (n * jnp.sqrt(jnp.float32(n)))             # ifft 1/n and module 1/sqrt(n)
    ang_i = 2.0 * jnp.pi * jnp.outer(perm.astype(jnp.float32), idx) / n
    G_re = jnp.cos(ang_i) * inv_scale                            # rows already permuted by `perm`
    G_im = jnp.sin(ang_i) * inv_scale
    DF_re = D[:, None] * F_re                                    # diag(D) @ F
    DF_im = D[:, None] * F_im
    M_re = (G_re @ DF_re - G_im @ DF_im) * A[None, :]            # ... @ diag(A)
    M_im = (G_re @ DF_im + G_im @ DF_re) * A[None, :]
    M = jnp.concatenate([M_re, M_im], axis=0).astype(jnp.float32)        # (2C, C)
    bias_col = (bias[perm] / jnp.sqrt(jnp.float32(n))).reshape(C, 1).astype(jnp.float32)

    slab_spec = pl.BlockSpec((pl.Squeezed(), C, tn_eff), lambda b, i: (b, 0, i))
    m_spec = pl.BlockSpec((2 * C, C), lambda b, i: (0, 0))
    b_spec = pl.BlockSpec((C, 1), lambda b, i: (0, 0))

    y_re, y_im = pl.pallas_call(
        acdc_kernel,
        out_shape=(jax.ShapeDtypeStruct((B, C, HW), jnp.float32),
                   jax.ShapeDtypeStruct((B, C, HW), jnp.float32)),
        grid_spec=pltpu.PrefetchScalarGridSpec(
            num_scalar_prefetch=0,
            grid=(B, n_lane),
            in_specs=[slab_spec, m_spec, b_spec],
            out_specs=(slab_spec, slab_spec)),
        compiler_params=pltpu.CompilerParams(
            dimension_semantics=("parallel", "parallel"),   # no reduction axis; shards across v7x TCs
            vmem_limit_bytes=32 << 20),                     # explicit scoped-VMEM budget (tiny usage)
    )(x3d, M, bias_col)

    y_re = y_re.reshape(B, C, H, W)
    y_im = y_im.reshape(B, C, H, W)
    return jax.lax.complex(y_re, y_im)


def acdc_reference(x, A, D, bias, perm):
    """Pure-JAX reference mirroring the PyTorch forward exactly."""
    n = A.shape[0]
    z = x * A.reshape(1, -1, 1, 1)
    z = jnp.fft.fft(z, axis=1, n=n)
    z = z * D.reshape(1, -1, 1, 1)
    z = jnp.fft.ifft(z, axis=1, n=n)
    z = z + bias.reshape(1, -1, 1, 1)
    z = jnp.take(z, perm, axis=1)                 # gather along channel dim
    return z / jnp.sqrt(jnp.float32(n))


if __name__ == "__main__":
    key = jax.random.PRNGKey(0)
    kx, ka, kd, kb, kp = jax.random.split(key, 5)

    B, C, H, W = 2, 8, 16, 16                     # in_f == out_f == 8
    x = jax.random.normal(kx, (B, C, H, W), dtype=jnp.float32)
    A = jax.random.uniform(ka, (C,), dtype=jnp.float32)      # torch.rand -> U[0,1)
    D = jax.random.uniform(kd, (C,), dtype=jnp.float32)
    bias = jax.random.uniform(kb, (C,), dtype=jnp.float32)
    perm = jax.random.permutation(kp, C)                      # torch.randperm

    out = acdc_forward(x, A, D, bias, perm)
    out = jax.block_until_ready(out)

    ref = acdc_reference(x, A, D, bias, perm)
    assert out.shape == (B, C, H, W) and jnp.iscomplexobj(out)
    np.testing.assert_allclose(np.asarray(out), np.asarray(ref), rtol=1e-4, atol=1e-4)
    print("KERNEL_OK")
</pallas_src>

<mosaic_0001>
module attributes {stable_mosaic.version = 11 : i64} {
  func.func @acdc_kernel(%arg0: i32, %arg1: i32, %arg2: memref<1x8x256xf32, #tpu.memory_space<vmem>>, %arg3: memref<16x8xf32, #tpu.memory_space<vmem>>, %arg4: memref<8x1xf32, #tpu.memory_space<vmem>>, %arg5: memref<1x8x256xf32, #tpu.memory_space<vmem>>, %arg6: memref<1x8x256xf32, #tpu.memory_space<vmem>>) attributes {dimension_semantics = [#tpu.dimension_semantics<parallel>, #tpu.dimension_semantics<parallel>], iteration_bounds = array<i64: 2, 1>, scalar_prefetch = 0 : i64, scratch_operands = 0 : i64, tpu.core_type = #tpu.core_type<tc>, window_params = [{transform_indices = @transform_0, window_bounds = array<i64: 1, 8, 256>}, {pipeline_mode = #tpu.pipeline_mode<synchronous>, transform_indices = @transform_1, window_bounds = array<i64: 16, 8>}, {pipeline_mode = #tpu.pipeline_mode<synchronous>, transform_indices = @transform_2, window_bounds = array<i64: 8, 1>}, {transform_indices = @transform_3, window_bounds = array<i64: 1, 8, 256>}, {transform_indices = @transform_4, window_bounds = array<i64: 1, 8, 256>}]} {
    %c0 = arith.constant 0 : index
    %c0_0 = arith.constant 0 : index
    %0 = vector.load %arg3[%c0, %c0_0] : memref<16x8xf32, #tpu.memory_space<vmem>>, vector<16x8xf32>
    %c0_1 = arith.constant 0 : index
    %c0_2 = arith.constant 0 : index
    %c0_3 = arith.constant 0 : index
    %1 = vector.load %arg2[%c0_1, %c0_2, %c0_3] : memref<1x8x256xf32, #tpu.memory_space<vmem>>, vector<1x8x256xf32>
    %2 = vector.shape_cast %1 : vector<1x8x256xf32> to vector<8x256xf32>
    %cst = arith.constant dense<0.000000e+00> : vector<16x256xf32>
    %3 = tpu.matmul %0, %2, %cst {dimension_numbers = #tpu.dot_dimension_numbers<[1], [0], [0], [1], [0, 0, 1, 1], [], []>} : vector<16x8xf32>, vector<8x256xf32>, vector<16x256xf32> -> vector<16x256xf32>
    %4 = vector.extract_strided_slice %3 {offsets = [0, 0], sizes = [8, 256], strides = [1, 1]} : vector<16x256xf32> to vector<8x256xf32>
    %c0_4 = arith.constant 0 : index
    %c0_5 = arith.constant 0 : index
    %5 = vector.load %arg4[%c0_4, %c0_5] : memref<8x1xf32, #tpu.memory_space<vmem>>, vector<8x1xf32>
    %6 = vector.broadcast %5 : vector<8x1xf32> to vector<8x256xf32>
    %7 = arith.addf %4, %6 : vector<8x256xf32>
    %c0_6 = arith.constant 0 : index
    %c0_7 = arith.constant 0 : index
    %c0_8 = arith.constant 0 : index
    %8 = vector.load %arg5[%c0_6, %c0_7, %c0_8] : memref<1x8x256xf32, #tpu.memory_space<vmem>>, vector<1x8x256xf32>
    %9 = vector.shape_cast %8 : vector<1x8x256xf32> to vector<8x256xf32>
    %10 = vector.shape_cast %7 : vector<8x256xf32> to vector<1x8x256xf32>
    tpu.vector_store %arg5[%c0_6, %c0_7, %c0_8], %10 {strides = array<i32>} : memref<1x8x256xf32, #tpu.memory_space<vmem>>, vector<1x8x256xf32>,
    %11 = vector.extract_strided_slice %3 {offsets = [8, 0], sizes = [8, 256], strides = [1, 1]} : vector<16x256xf32> to vector<8x256xf32>
    %c0_9 = arith.constant 0 : index
    %c0_10 = arith.constant 0 : index
    %c0_11 = arith.constant 0 : index
    %12 = vector.load %arg6[%c0_9, %c0_10, %c0_11] : memref<1x8x256xf32, #tpu.memory_space<vmem>>, vector<1x8x256xf32>
    %13 = vector.shape_cast %12 : vector<1x8x256xf32> to vector<8x256xf32>
    %14 = vector.shape_cast %11 : vector<8x256xf32> to vector<1x8x256xf32>
    tpu.vector_store %arg6[%c0_9, %c0_10, %c0_11], %14 {strides = array<i32>} : memref<1x8x256xf32, #tpu.memory_space<vmem>>, vector<1x8x256xf32>,
    return
  }
  func.func @transform_0(%arg0: i32, %arg1: i32) -> (i32, i32, i32) {
    %c0_i32 = arith.constant 0 : i32
    %c0_i32_0 = arith.constant 0 : i32
    return %arg0, %c0_i32, %arg1 : i32, i32, i32
  }
  func.func @transform_1(%arg0: i32, %arg1: i32) -> (i32, i32) {
    %c0_i32 = arith.constant 0 : i32
    %c0_i32_0 = arith.constant 0 : i32
    %c0_i32_1 = arith.constant 0 : i32
    return %c0_i32, %c0_i32_0 : i32, i32
  }
  func.func @transform_2(%arg0: i32, %arg1: i32) -> (i32, i32) {
    %c0_i32 = arith.constant 0 : i32
    %c0_i32_0 = arith.constant 0 : i32
    %c0_i32_1 = arith.constant 0 : i32
    return %c0_i32, %c0_i32_0 : i32, i32
  }
  func.func @transform_3(%arg0: i32, %arg1: i32) -> (i32, i32, i32) {
    %c0_i32 = arith.constant 0 : i32
    %c0_i32_0 = arith.constant 0 : i32
    return %arg0, %c0_i32, %arg1 : i32, i32, i32
  }
  func.func @transform_4(%arg0: i32, %arg1: i32) -> (i32, i32, i32) {
    %c0_i32 = arith.constant 0 : i32
    %c0_i32_0 = arith.constant 0 : i32
    return %arg0, %c0_i32, %arg1 : i32, i32, i32
  }
}

</mosaic_0001>

<bundles_post_ra>
// kernel: tpu_custom_call.1
= control target key start
LH: loop header
LB: loop body
LE: loop exit
PB: predicated region body
PF: predicated region fallthrough
CT: control target
= control target key end

     0   :  { %10 = vsyncpa [#allocation3], 0  ;;  %s877_s0 = inlined_call_operand.vmem [shape: f32[2,8,256], index: 0, kind: input, shape index: {}]   ;;  %s878_s1 = inlined_call_operand.vmem [shape: f32[16,8], index: 1, kind: input, shape index: {}]   ;;  %s879_s2 = inlined_call_operand.vmem [shape: f32[8,1], index: 2, kind: input, shape index: {}]   ;;  %s880_s3 = inlined_call_operand.hbm [shape: f32[2,8,256], index: 3, kind: output, shape index: {0}]   ;;  %s881_s4 = inlined_call_operand.hbm [shape: f32[2,8,256], index: 4, kind: output, shape index: {1}]  }
   0x1   :  { %12 = vsyncpa [#allocation3 + $0x1], 0 }
   0x2   :  { %13 = vsyncpa [#allocation5], 0 }
   0x3   :  { %15 = vsyncpa [#allocation5 + $0x1], 0  ;;  %s718_s15 = smov 0   ;;  %s720_s16 = smov 0  }
   0x4   :  { %s722_s17 = smov 0   ;;  %s724_s18 = smov 0  }
   0x5   :  { %s726_s19 = smov 0   ;;  %s728_s20 = smov 0  }
   0x6 LB: > { %s490_s21 = sadd.s32 4294967295, %s687_s20   ;;  %s491_s22 = sadd.s32 4294967294, %s687_s20   ;;  %s687_s20 = sphi %s728_s20, %s21_s20   ;;  %s683_s19 = sphi %s726_s19, %s888_s19   ;;  %s679_s18 = sphi %s724_s18, %s887_s18   ;;  %s675_s17 = sphi %s722_s17, %s886_s17   ;;  %s671_s16 = sphi %s720_s16, %s885_s16   ;;  %s667_s15 = sphi %s718_s15, %s884_s15  }
   0x7   : > { %s33_s23 = sadd.s32 1, %s683_s19  ;;  %s112_s24 = sadd.s32 1, %s675_s17 }
   0x8   : > { %p35_p0 = scmp.ge.s32.totalorder %s33_s23, 2  ;;  %p122_p1 = scmp.ne.s32.totalorder %s675_s17, %s671_s16 }
   0x9   : > { %p123_p2 = scmp.eq.s32.totalorder %s490_s21, 1  ;;  %p128_p3 = scmp.ne.s32.totalorder %s671_s16, %s667_s15 }
   0xa   : > { %s890_s23 = smov (%p35_p0, %s33_s23), 0  ;;  %p129_p5 = scmp.eq.s32.totalorder %s491_s22, 1 }
   0xb   : > { %p758_p4 = por %p123_p2, %p122_p1  ;;  %s107_s26 = ssub.s32 %s683_s19, %s890_s23 }
   0xc   : > { %p494_p6 = scmp.ge.s32.totalorder %s687_s20, 1  ;;  %p110_p7 = scmp.eq.s32.totalorder %s107_s26, 0 }
   0xd   : > { %p765_p8 = por %p129_p5, %p128_p3  ;;  %p194_p9 = scmp.lt.s32.totalorder %s687_s20, 3 }
   0xe   : > { %s771_s28 = scalar_select %p110_p7, %s675_s17, %s112_s24  }
   0xf   : > { %p195_p10 = pnand %p494_p6, %p194_p9 }
  0x10   : > { %p230_p11 = scmp.lt.s32.totalorder (!%p195_p10), %s679_s18, 1  ;;  %v689_v0 = vmov (!%p195_p10), 0.0   ;;  %v329_v1 = vld [vmem:[%s879_s2] sm:$0xff] (!%p195_p10)  ;;  %v690_v2 = vmov (!%p195_p10), 0   ;;  %vm245_vm0 = vcmask (!%p195_p10), 64512   ;;  %v242_v6 = vld [vmem:[%s878_s1 + $0x8] sm:$0xff] (!%p195_p10) }
  0x11   : > { %198 = sbr.rel (%p195_p10) target bundleno = 282 (0x11a), region = 32  ;;  %316 = vmatprep.mubr.f32.mxu0 (!%p195_p10), %v689_v0  ;;  %322 = vmatprep.mubr.f32.mxu1 (!%p195_p10), %v689_v0  ;;  %v241_v3 = vld [vmem:[%s878_s1] sm:$0xff] (!%p195_p10)  ;;  %s788_s14 = sand.u32 (!%p195_p10), 1, %s671_s16  }
  0x12   : > { %576 = vset.pattern.permute.xlu0 (!%p195_p10), %v690_v2  ;;  %s495_s21 = sshll.u32 (!%p195_p10), %s788_s14, 4  ;;  %s510_s26 = sshll.u32 (!%p195_p10), %s679_s18, 8 }
  0x13   : > { %332 = vperm.xlu0 (!%p195_p10), %576, %v329_v1   ;;  %s228_s22 = scalar_lea.vmem (!%p195_p10), [#allocation4], %s495_s21  ;;  %s794_s29 = scalar_lea.vmem (!%p195_p10), [#allocation2], %s495_s21 }
  0x14   : > { %s379_s24 = sshll.u32 (!%p195_p10), %s228_s22, 4  ;;  %s363_s30 = sshll.u32 (!%p195_p10), %s794_s29, 4  ;;  %s792_s24 = int_to_ptr.vmem [resolvable:$true] %s379_s24  ;;  %s807_s30 = int_to_ptr.vmem [resolvable:$true] %s363_s30 }
  0x15   : > { %s800_s7 = scalar_lea.hbm (!%p195_p10), %s881_s4, %s510_s26  ;;  %s347_s10 = scalar_lea.sflag (!%p195_p10), [#allocation5], %s788_s14 }
  0x16   : > { %s577_s11 = scalar_lea.vmem (!%p195_p10), %s792_s24, 256  ;;  %s691_s12 = smov (!%p195_p10), [#allocation4]  }
  0x17   : > { %p578_p12 = scmp.ne.s32.totalorder (!%p195_p10), %s792_s24, %s577_s11  ;;  %s581_s13 = sshll.u32 (!%p195_p10), %s691_s12, 4  ;;  %s582_s13 = int_to_ptr.vmem [resolvable:$false] %s581_s13 }
  0x18   : > { %s231_s5 = scalar_select %p230_p11, %s679_s18, 1 }
  0x19   : > { %p579_p13 = pnand %p578_p12, %p758_p4  ;;  %s583_s21 = scalar_lea.vmem %s582_s13, 512 }
  0x1a   : > { %s509_s6 = sshll.u32 %s231_s5, 4  ;;  %p584_p1 = scmp.lt.s32.totalorder %s792_s24, %s582_s13 }
  0x1b   : > { %s237_s9 = scalar_lea.vmem %s877_s0, %s509_s6  ;;  %p580_p0 = pneg %p579_p13 }
  0x1c   : > { %v244_v4 = vld [vmem:[%s237_s9 + $0x8] sm:$0xff]  ;;  %v243_v5 = vld [vmem:[%s237_s9] sm:$0xff]  ;;  %s805_s9 = scalar_lea.hbm %s880_s3, %s510_s26  ;;  %p585_p2 = scmp.lt.s32.totalorder %s583_s21, %s577_s11 }
  0x1d   : > { %252 = vmatprep.subr.mxu0 %v244_v4  ;;  %512 = vmatprep.subr.mxu1 %v244_v4 }
  0x1e   : > { %253 = vmatpush1.msra.mxu0 %v243_v5  ;;  %513 = vmatpush1.msra.mxu1 %v243_v5  ;;  %p586_p3 = por %p585_p2, %p584_p1 }
  0x1f   : > { %499 = vmatmul.mubr.msk.f32.vlgmr.msra.gmra.mrb[0].mxu0 %vm245_vm0, %v241_v3  ;;  %500 = vmatmul.mubr.msk.f32.vlgmr.msra.gmra.mrb[0].mxu1 %vm245_vm0, %v242_v6 }
  0x20   : > { %p587_p5 = pnand %p586_p3, %p580_p0 }
  0x92   : > { %v333_v7 = vpop.permute.xlu0 %332 }
  0xf2   : > { %v318_v8 = vpop.f32.mrb[0].mxu0  ;;  %v324_v9 = vpop.f32.mrb[0].mxu1 }
  0xf3   : > { %v335_v10 = vadd.f32 %v333_v7, %v318_v8  ;;  %v320_v11 = vpop.f32.mrb[1].mxu0  ;;  %339 = vst [vmem:[%s228_s22] sm:$0xff] %v324_v9  ;;  %v326_v12 = vpop.f32.mrb[1].mxu1 }
  0xf4   : > { %v336_v13 = vadd.f32 %v333_v7, %v320_v11  ;;  %340 = vst [vmem:[%s228_s22 + $0x8] sm:$0xff] %v326_v12 }
  0xf5   : > { %337 = vst [vmem:[%s794_s29] sm:$0xff] %v335_v10 }
  0xf6   : > { %590 = shalt.err (!%p587_p5)
}
  0xf7   : > { %s591_s22 = scalar_lea.hbm %s800_s7, 256  ;;  %s595_s6 = scalar_lea.hbm %s881_s4, 512 }
  0xf8   : > { %p592_p6 = scmp.ne.s32.totalorder %s800_s7, %s591_s22  ;;  %p596_p10 = scmp.lt.u32.totalorder %s800_s7, %s881_s4 }
  0xf9   : > { %p597_p11 = scmp.lt.u32.totalorder %s595_s6, %s591_s22  ;;  %p599_p13 = scmp.lt.u32.totalorder %s591_s22, %s800_s7 }
  0xfa   : > { %p593_p7 = pnand %p592_p6, %p758_p4 }
  0xfb   : > { %p598_p12 = por %p597_p11, %p596_p10 }
  0xfc   : > { %p594_p9 = pneg %p593_p7 }
  0xfd   : > { %p600_p0 = por %p599_p13, %p598_p12 }
  0xff   : > { %p601_p1 = pnand %p600_p0, %p594_p9 }
 0x101   : > { %604 = shalt.err (!%p601_p1)
}
 0x102   : > { %515 = dma.vmem_to_hbm [thread:$0]  (%p758_p4), %s792_s24, 256, %s800_s7, %s347_s10   ;;  %338 = vst [vmem:[%s794_s29 + $0x8] sm:$0xff] %v336_v13 }
 0x103   : > { %s342_s11 = scalar_lea.sflag [#allocation3], %s788_s14  ;;  %s605_s12 = scalar_lea.vmem %s807_s30, 256 }
 0x104   : > { %p606_p2 = scmp.ne.s32.totalorder %s807_s30, %s605_s12  ;;  %s692_s13 = smov [#allocation2]  }
 0x105   : > { %s609_s21 = sshll.u32 %s692_s13, 4  ;;  %s610_s21 = int_to_ptr.vmem [resolvable:$false] %s609_s21 }
 0x106   : > { %p607_p3 = pnand %p606_p2, %p758_p4  ;;  %s611_s22 = scalar_lea.vmem %s610_s21, 512 }
 0x107   : > { %p612_p6 = scmp.lt.s32.totalorder %s807_s30, %s610_s21  ;;  %p613_p7 = scmp.lt.s32.totalorder %s611_s22, %s605_s12 }
 0x108   : > { %p608_p5 = pneg %p607_p3 }
 0x109   : > { %p614_p9 = por %p613_p7, %p612_p6 }
 0x10b   : > { %p615_p10 = pnand %p614_p9, %p608_p5 }
 0x10d   : > { %618 = shalt.err (!%p615_p10)
}
 0x10e   : > { %s619_s14 = scalar_lea.hbm %s805_s9, 256  ;;  %s623_s7 = scalar_lea.hbm %s880_s3, 512 }
 0x10f   : > { %p620_p11 = scmp.ne.s32.totalorder %s805_s9, %s619_s14  ;;  %p624_p0 = scmp.lt.u32.totalorder %s805_s9, %s880_s3 }
 0x110   : > { %p625_p1 = scmp.lt.u32.totalorder %s623_s7, %s619_s14  ;;  %p627_p3 = scmp.lt.u32.totalorder %s619_s14, %s805_s9 }
 0x111   : > { %p621_p12 = pnand %p620_p11, %p758_p4 }
 0x112   : > { %p626_p2 = por %p625_p1, %p624_p0 }
 0x113   : > { %p622_p13 = pneg %p621_p12 }
 0x114   : > { %p628_p5 = por %p627_p3, %p626_p2 }
 0x116   : > { %p629_p6 = pnand %p628_p5, %p622_p13 }
 0x118   : > { %632 = shalt.err (!%p629_p6)
}
 0x119   : > { %514 = dma.vmem_to_hbm [thread:$0]  (%p758_p4), %s807_s30, 256, %s805_s9, %s342_s11  }
 0x11a PF: > { %p525_p7 = scmp.ge.s32.totalorder %s687_s20, 2  ;;  %s391_s5 = sand.u32 1, %s667_s15  }
 0x11b   : > { %s392_s6 = scalar_lea.sflag [#allocation3], %s391_s5 }
 0x11c   : > { %p519_p9 = pnand %p525_p7, %p765_p8 }
 0x11e   : > { %658 = dma.done.wait (!%p519_p9), %s392_s6, 256  }
 0x11f   : > { %660 = vsyncadd (!%p519_p9), %s392_s6, 4294967040  ;;  %s401_s18 = scalar_lea.sflag [#allocation5], %s391_s5 }
 0x120   : > { %662 = dma.done.wait (!%p519_p9), %s401_s18, 256  }
 0x121   : > { %664 = vsyncadd (!%p519_p9), %s401_s18, 4294967040  ;;  %s21_s20 = sadd.s32 1, %s687_s20   ;;  %s884_s15 = smov %s671_s16 }
 0x122   : > { %p18_p10 = scmp.ge.s32.totalorder %s21_s20, 4   ;;  %s885_s16 = smov %s675_s17 }
 0x123   : > { %s886_s17 = smov %s771_s28  ;;  %s887_s18 = smov %s683_s19 }
 0x124   : > { %s888_s19 = smov %s890_s23  ;;  %20 = sbr.rel (!%p18_p10) target bundleno = 6 (0x6), region = 84 }
 0x12b   :  { %406 = vsyncpa [#allocation3], 1 }
 0x12c   :  { %408 = vsyncpa [#allocation3 + $0x1], 1 }
 0x12d   :  { %409 = vsyncpa [#allocation5], 1 }
 0x12e   :  { %411 = vsyncpa [#allocation5 + $0x1], 1 }

</bundles_post_ra>
